<compile_context>
chip_gen: v6e
topology: v6e:2x2x1
jax: 0.10.0
libtpu: 0.0.40
codegen_flags: <defaults>
</compile_context>

<pallas_src>
import functools

import jax
import jax.numpy as jnp
from jax.experimental import pallas as pl
from jax.experimental.pallas import tpu as pltpu


def _round_up(x: int, m: int) -> int:
    return (x + m - 1) // m * m


def _dataset_classifier_kernel(x_ref, w_ref, b_ref, o_ref):
    # x_ref: [B_TILE, H]     CLS activations (original activation dtype)
    # w_ref: [H, N_PAD]      pre-transposed, zero-padded weight (VMEM-resident)
    # b_ref: [1, N_PAD]      zero-padded bias, float32 (VMEM-resident)
    # o_ref: [B_TILE, N_PAD]
    x = x_ref[...]
    if x.dtype != w_ref.dtype:
        x = x.astype(w_ref.dtype)  # PyTorch: cast activations to the weight dtype
    acc = jnp.dot(x, w_ref[...], preferred_element_type=jnp.float32)
    o_ref[...] = (acc + b_ref[...]).astype(o_ref.dtype)


def prepare_dataset_classifier_params(weight, bias):
    """One-time (parameter-load-time) layout prep for the classifier params.

    Args:
      weight: [N, H] (nn.Linear layout)
      bias:   [N]
    Returns:
      w_t:   [H, N_PAD] weight-dtype (pre-transposed, N padded to 128 lanes)
      b_pad: [1, N_PAD] float32

    Do this ONCE when the parameters are loaded; do not call per forward step.
    """
    num_datasets, _ = weight.shape
    n_pad = _round_up(max(num_datasets, 1), 128)
    w_t = jnp.pad(weight, ((0, n_pad - num_datasets), (0, 0))).T       # [H, N_PAD]
    b_pad = jnp.pad(bias.astype(jnp.float32), (0, n_pad - num_datasets))
    return w_t, b_pad.reshape(1, n_pad)


def dataset_classifier_forward(hidden_states, w_t, b_pad, *, num_datasets):
    """Pallas equivalent of DatasetClassifier.forward.

    Args:
      hidden_states: [B, S, H]
      w_t:           [H, N_PAD]  (from prepare_dataset_classifier_params)
      b_pad:         [1, N_PAD]  float32
      num_datasets:  N (static)
    Returns:
      logits: [B, N] in the weight dtype.
    """
    B, S, H = hidden_states.shape
    n_pad = w_t.shape[1]
    w_dtype = w_t.dtype
    x_item = jnp.dtype(hidden_states.dtype).itemsize
    w_item = jnp.dtype(w_dtype).itemsize

    # CLS slice: fused into the pallas_call operand via allow_input_fusion, so
    # it does not materialize an extra [B, H] copy in HBM.  The dtype cast is
    # done inside the kernel.
    x = hidden_states[:, 0, :]                                   # [B, H]

    # --- batch tiling -------------------------------------------------------
    # Sublane multiple for the narrower of activation / output dtypes.
    sublane = 32 // max(min(x_item, w_item), 1)                  # 8 / 16 / 32
    # ~4 MiB of activations per tile, but keep >=4 grid steps for large B so
    # the "parallel" axis shards across v7x's two TensorCores and the DMA
    # pipeline has work to overlap.
    rows_budget = max(sublane, (4 * 1024 * 1024) // max(H * x_item, 1))
    rows_cap = max(sublane, _round_up(pl.cdiv(B, 4), sublane))
    b_tile = max(sublane, (min(rows_budget, rows_cap) // sublane) * sublane)
    if b_tile >= B:
        b_tile = B            # single full-dim block (always layout-legal)
    grid = (pl.cdiv(B, b_tile),)   # ragged last block is masked by Pallas

    # Explicit VMEM budget: 2x activation tiles (double-buffered) + resident
    # weight/bias (single-buffered) + 2x output tiles, plus headroom.
    vmem_bytes = (2 * b_tile * H * x_item
                  + H * n_pad * w_item
                  + n_pad * 4
                  + 2 * b_tile * n_pad * w_item)
    vmem_limit = int(min(max(vmem_bytes + (8 << 20), 16 << 20), 48 << 20))

    cost = pl.CostEstimate(
        flops=2 * B * H * n_pad,
        transcendentals=0,
        bytes_accessed=(B * H * x_item            # CLS activations (read once)
                        + H * n_pad * w_item      # weight (read once, resident)
                        + n_pad * 4               # bias
                        + B * n_pad * w_item),    # logits write
    )

    out = pl.pallas_call(
        _dataset_classifier_kernel,
        out_shape=jax.ShapeDtypeStruct((B, n_pad), w_dtype),
        grid=grid,
        in_specs=[
            # Activation tile marches over the batch (double-buffered).
            pl.BlockSpec((b_tile, H), lambda i: (i, 0)),
            # Weight / bias: constant index_map -> resident; one buffer each.
            pl.BlockSpec((H, n_pad), lambda i: (0, 0),
                         pipeline_mode=pl.Buffered(1)),
            pl.BlockSpec((1, n_pad), lambda i: (0, 0),
                         pipeline_mode=pl.Buffered(1)),
        ],
        out_specs=pl.BlockSpec((b_tile, n_pad), lambda i: (i, 0)),
        compiler_params=pltpu.CompilerParams(
            dimension_semantics=("parallel",),
            vmem_limit_bytes=vmem_limit,
            allow_input_fusion=[True, False, False],
        ),
        cost_estimate=cost,
    )(x, w_t, b_pad)

    return out[:, :num_datasets]


def dataset_classifier_apply(hidden_states, weight, bias):
    """Convenience one-shot wrapper matching the PyTorch module signature.

    Prefer prepare_dataset_classifier_params() once + dataset_classifier_forward()
    in a real loop so the weight pad+transpose stays out of the per-step hot path.
    """
    w_t, b_pad = prepare_dataset_classifier_params(weight, bias)
    return dataset_classifier_forward(hidden_states, w_t, b_pad,
                                      num_datasets=weight.shape[0])


if __name__ == "__main__":
    # Small shapes consistent with the module's forward contract.
    batch, seq_len, hidden_size, num_datasets = 2, 8, 32, 4

    key = jax.random.PRNGKey(0)
    k_h, k_w, k_b, k_h2 = jax.random.split(key, 4)

    hidden_states = jax.random.normal(
        k_h, (batch, seq_len, hidden_size), dtype=jnp.float32
    )

    # Deterministic nn.Linear-style init (uniform bound 1/sqrt(H)).
    bound = 1.0 / jnp.sqrt(jnp.float32(hidden_size))
    weight = jax.random.uniform(
        k_w, (num_datasets, hidden_size), dtype=jnp.float32,
        minval=-bound, maxval=bound,
    )
    bias = jax.random.uniform(
        k_b, (num_datasets,), dtype=jnp.float32, minval=-bound, maxval=bound
    )

    # One-time parameter prep (kept out of the per-call hot path).
    w_t, b_pad = prepare_dataset_classifier_params(weight, bias)

    fwd = jax.jit(dataset_classifier_forward, static_argnames=("num_datasets",))
    logits = jax.block_until_ready(
        fwd(hidden_states, w_t, b_pad, num_datasets=num_datasets)
    )

    ref = hidden_states[:, 0, :] @ weight.T + bias
    assert logits.shape == (batch, num_datasets)
    assert logits.dtype == weight.dtype
    assert jnp.allclose(logits, ref, atol=1e-5, rtol=1e-5)

    # Second check: batch NOT a multiple of the tile -> exercises the ragged
    # final block, multi-step "parallel" grid, and resident-weight path.
    b2, s2, h2, n2 = 20, 4, 256, 10
    hs2 = jax.random.normal(k_h2, (b2, s2, h2), dtype=jnp.float32)
    w2 = jax.random.uniform(k_w, (n2, h2), dtype=jnp.float32,
                            minval=-0.05, maxval=0.05)
    bi2 = jax.random.uniform(k_b, (n2,), dtype=jnp.float32,
                             minval=-0.05, maxval=0.05)
    w2_t, b2_pad = prepare_dataset_classifier_params(w2, bi2)
    logits2 = jax.block_until_ready(fwd(hs2, w2_t, b2_pad, num_datasets=n2))
    ref2 = hs2[:, 0, :] @ w2.T + bi2
    assert logits2.shape == (b2, n2)
    assert jnp.allclose(logits2, ref2, atol=1e-4, rtol=1e-4)

    print("KERNEL_OK")
</pallas_src>

<mosaic_0001>
module attributes {stable_mosaic.version = 11 : i64} {
  func.func @_dataset_classifier_kernel(%arg0: i32, %arg1: memref<2x32xf32, #tpu.memory_space<vmem>>, %arg2: memref<32x128xf32, #tpu.memory_space<vmem>>, %arg3: memref<1x128xf32, #tpu.memory_space<vmem>>, %arg4: memref<2x128xf32, #tpu.memory_space<vmem>>) attributes {dimension_semantics = [#tpu.dimension_semantics<parallel>], iteration_bounds = array<i64: 1>, scalar_prefetch = 0 : i64, scratch_operands = 0 : i64, tpu.core_type = #tpu.core_type<tc>, window_params = [{transform_indices = @transform_0, window_bounds = array<i64: 2, 32>}, {pipeline_mode = #tpu.pipeline_mode<synchronous>, transform_indices = @transform_1, window_bounds = array<i64: 32, 128>}, {pipeline_mode = #tpu.pipeline_mode<synchronous>, transform_indices = @transform_2, window_bounds = array<i64: 1, 128>}, {transform_indices = @transform_3, window_bounds = array<i64: 2, 128>}]} {
    %c0 = arith.constant 0 : index
    %c0_0 = arith.constant 0 : index
    %0 = vector.load %arg1[%c0, %c0_0] : memref<2x32xf32, #tpu.memory_space<vmem>>, vector<2x32xf32>
    %c0_1 = arith.constant 0 : index
    %c0_2 = arith.constant 0 : index
    %1 = vector.load %arg2[%c0_1, %c0_2] : memref<32x128xf32, #tpu.memory_space<vmem>>, vector<32x128xf32>
    %cst = arith.constant dense<0.000000e+00> : vector<2x128xf32>
    %2 = tpu.matmul %0, %1, %cst {dimension_numbers = #tpu.dot_dimension_numbers<[1], [0], [0], [1], [0, 0, 1, 1], [], []>} : vector<2x32xf32>, vector<32x128xf32>, vector<2x128xf32> -> vector<2x128xf32>
    %c0_3 = arith.constant 0 : index
    %c0_4 = arith.constant 0 : index
    %3 = vector.load %arg3[%c0_3, %c0_4] : memref<1x128xf32, #tpu.memory_space<vmem>>, vector<1x128xf32>
    %4 = vector.broadcast %3 : vector<1x128xf32> to vector<2x128xf32>
    %5 = arith.addf %2, %4 : vector<2x128xf32>
    %c0_5 = arith.constant 0 : index
    %c0_6 = arith.constant 0 : index
    %6 = vector.load %arg4[%c0_5, %c0_6] : memref<2x128xf32, #tpu.memory_space<vmem>>, vector<2x128xf32>
    tpu.vector_store %arg4[%c0_5, %c0_6], %5 {strides = array<i32>} : memref<2x128xf32, #tpu.memory_space<vmem>>, vector<2x128xf32>,
    return
  }
  func.func @transform_0(%arg0: i32) -> (i32, i32) {
    %c0_i32 = arith.constant 0 : i32
    %c0_i32_0 = arith.constant 0 : i32
    return %arg0, %c0_i32 : i32, i32
  }
  func.func @transform_1(%arg0: i32) -> (i32, i32) {
    %c0_i32 = arith.constant 0 : i32
    %c0_i32_0 = arith.constant 0 : i32
    %c0_i32_1 = arith.constant 0 : i32
    return %c0_i32, %c0_i32_0 : i32, i32
  }
  func.func @transform_2(%arg0: i32) -> (i32, i32) {
    %c0_i32 = arith.constant 0 : i32
    %c0_i32_0 = arith.constant 0 : i32
    %c0_i32_1 = arith.constant 0 : i32
    return %c0_i32, %c0_i32_0 : i32, i32
  }
  func.func @transform_3(%arg0: i32) -> (i32, i32) {
    %c0_i32 = arith.constant 0 : i32
    %c0_i32_0 = arith.constant 0 : i32
    return %arg0, %c0_i32 : i32, i32
  }
}

</mosaic_0001>

<bundles_post_ra>
// kernel: dataset_classifier_forward.1
= control target key start
LH: loop header
LB: loop body
LE: loop exit
PB: predicated region body
PF: predicated region fallthrough
CT: control target
= control target key end

     0   :  { %8 = vsyncpa [#allocation3], 0  ;;  %s237_s0 = inlined_call_operand.vmem [shape: f32[2,32], index: 0, kind: input, shape index: {}]   ;;  %s238_s1 = inlined_call_operand.hbm [shape: f32[32,128], index: 1, kind: input, shape index: {}]   ;;  %s239_s2 = inlined_call_operand.vmem [shape: f32[1,128], index: 2, kind: input, shape index: {}]   ;;  %s240_s3 = inlined_call_operand.hbm [shape: f32[2,128], index: 3, kind: output, shape index: {}]  }
   0x1   :  { %9 = vsyncpa [#allocation4], 0  ;;  %s199_s12 = smov [#allocation2]  }
   0x2   :  { %s17_s13 = sshll.u32 %s199_s12, 4  ;;  %s18_s13 = int_to_ptr.vmem [resolvable:$true] %s17_s13 }
   0x3   :  { %s163_s14 = scalar_lea.vmem %s18_s13, 512  ;;  %p168_p1 = scmp.lt.s32.totalorder %s18_s13, %s18_s13 }
   0x4   :  { %p164_p0 = scmp.ne.s32.totalorder %s18_s13, %s163_s14  ;;  %p169_p2 = scmp.lt.s32.totalorder %s163_s14, %s163_s14 }
   0x6   :  { %p170_p3 = por %p169_p2, %p168_p1 }
   0x8   :  { %p171_p4 = pnand %p170_p3, %p164_p0 }
   0xa   :  { %174 = shalt.err (!%p171_p4)
}
   0xb   :  { %s200_s15 = smov 128   ;;  %s201_s16 = smov 8  }
   0xc   :  { %23 = dma.hbm_to_vmem [thread:$0]  %s238_s1, 512, %s18_s13, [#allocation3], %s200_s15, %s200_s15, %s201_s16  }
   0xd   :  { %195 = dma.done.wait [#allocation3], 512  }
   0xe   :  { %196 = vsyncadd [#allocation3], 4294966784  ;;  %v202_v0 = vmov 0.0   ;;  %vm203_vm0 = vmmov 0   ;;  %v33_v1 = vld [vmem:[#allocation2 + $0x18] sm:$0xff]  ;;  %v32_v2 = vld [vmem:[#allocation2 + $0x10] sm:$0xff] }
   0xf   :  { %138 = vmatprep.subr.mxu0 %v202_v0  ;;  %146 = vmatprep.mubr.msk.f32.mxu0 %vm203_vm0, %v202_v0  ;;  %v31_v3 = vld [vmem:[#allocation2 + $0x8] sm:$0xff]  ;;  %v30_v4 = vld [vmem:[#allocation2] sm:$0xff]  ;;  %vm41_vm1 = vcmask 261120   ;;  %s204_s22 = smov [#allocation5]  }
  0x10   :  { %139 = vmatpush3.msra.mxu0 %v33_v1  ;;  %v29_v5 = vld [vmem:[%s237_s0] sm:$0x3]  ;;  %s122_s23 = sshll.u32 %s204_s22, 4  ;;  %s123_s23 = int_to_ptr.vmem [resolvable:$true] %s122_s23 }
  0x11   :  { %140 = vmatprep.subr.mxu0 %v202_v0  ;;  %v131_v6 = vld [vmem:[%s239_s2] ss:$0 sm:$0xff]  ;;  %s175_s24 = scalar_lea.vmem %s123_s23, 32  ;;  %p180_p6 = scmp.lt.s32.totalorder %s123_s23, %s123_s23 }
  0x12   :  { %141 = vmatpush3.msra.mxu0 %v32_v2  ;;  %p176_p5 = scmp.ne.s32.totalorder %s123_s23, %s175_s24  ;;  %p181_p7 = scmp.lt.s32.totalorder %s175_s24, %s175_s24 }
  0x13   :  { %142 = vmatprep.subr.mxu0 %v202_v0 }
  0x14   :  { %143 = vmatpush3.msra.mxu0 %v31_v3  ;;  %p182_p8 = por %p181_p7, %p180_p6 }
  0x15   :  { %144 = vmatprep.subr.mxu0 %v202_v0 }
  0x16   :  { %145 = vmatpush3.msra.mxu0 %v30_v4  ;;  %p183_p9 = pnand %p182_p8, %p176_p5 }
  0x17   :  { %147 = vmatmul.mubr.msk.f32.vlgmr.msra.gmra.mxu0 %vm41_vm1, %v29_v5 }
  0xd7   :  { %v111_v7 = vpop.f32.mrf.mxu0 }
  0xd8   :  { %v112_v8 = vadd.f32 %v131_v6, %v111_v7 }
  0xd9   :  { %v148_v9 = vpop.f32.mrf.mxu0 }
  0xda   :  { %115 = vst [vmem:[#allocation5] sm:$0x3] %v112_v8 }
  0xdb   :  { %186 = shalt.err (!%p183_p9)
}
  0xdc   :  { %125 = dma.vmem_to_hbm [thread:$0]  %s123_s23, 32, %s240_s3, [#allocation4]  }
  0xdd   :  { %197 = dma.done.wait [#allocation4], 32  }
  0xde   :  { %198 = vsyncadd [#allocation4], 4294967264 }
  0xdf   :  { %129 = vsyncpa [#allocation3], 1 }
  0xe0   :  { %130 = vsyncpa [#allocation4], 1 }

</bundles_post_ra>
